<compile_context>
chip_gen: v7x
topology: tpu7x:2x2x1
jax: 0.10.0
libtpu: 0.0.40
codegen_flags: <defaults>
</compile_context>

<pallas_src>
import math
import jax
import jax.numpy as jnp
from jax.experimental import pallas as pl
from jax.experimental.pallas import tpu as pltpu

DEFAULT_BOUND = 0.01


# ---------------------------------------------------------------------------
# exact-erf GELU, kernel-safe (only exp / mul / add / abs / where)
# ---------------------------------------------------------------------------
def _erf_approx(x):
    # Abramowitz & Stegun 7.1.26, max abs error ~1.5e-7.
    a1, a2, a3, a4, a5 = (0.254829592, -0.284496736, 1.421413741,
                          -1.453152027, 1.061405429)
    p = 0.3275911
    ax = jnp.abs(x)
    t = 1.0 / (1.0 + p * ax)
    poly = ((((a5 * t + a4) * t + a3) * t + a2) * t + a1) * t
    y = 1.0 - poly * jnp.exp(-(ax * ax))
    return jnp.where(x < 0.0, -y, y)


def _gelu_exact(x):
    # nn.GELU() default (erf form), matching SimpleMLP's non_linearity.
    return 0.5 * x * (1.0 + _erf_approx(x * (1.0 / math.sqrt(2.0))))


# ---------------------------------------------------------------------------
# Pallas kernel: value = gelu(e @ W1 + b1) @ W2 + b2 + out_parameters + bias_bias
# ---------------------------------------------------------------------------
def _spredictor_kernel(e_ref, w1_ref, b1_ref, w2_ref, b2_ref, outp_ref, bb_ref, o_ref):
    d_in = e_ref.shape[1]
    # Pad the single parameter row to 8 sublanes -> clean (8, K) MXU tiles.
    e = jnp.broadcast_to(e_ref[...], (8, d_in))
    h = jnp.dot(e, w1_ref[...], preferred_element_type=jnp.float32) + b1_ref[...]
    h = _gelu_exact(h)
    v = jnp.dot(h, w2_ref[...], preferred_element_type=jnp.float32) + b2_ref[...]
    o_ref[...] = (v[0:1, :] + outp_ref[...] + bb_ref[0]).astype(o_ref.dtype)


def spredictor_value(params):
    """Fused SPredictor forward value: (out_features,) vector, one pallas_call."""
    e, w1, b1 = params["expansion_data"], params["w1"], params["b1"]
    w2, b2 = params["w2"], params["b2"]
    outp, bb = params["out_parameters"], params["bias_bias"]
    d_out = w2.shape[1]

    vmem = pl.BlockSpec(memory_space=pltpu.MemorySpace.VMEM)
    smem = pl.BlockSpec(memory_space=pltpu.MemorySpace.SMEM)

    out = pl.pallas_call(
        _spredictor_kernel,
        out_shape=jax.ShapeDtypeStruct((1, d_out), e.dtype),
        in_specs=[vmem, vmem, vmem, vmem, vmem, vmem, smem],
        out_specs=vmem,
    )(e, w1, b1, w2, b2, outp, bb)
    return out.reshape(d_out)


def spredictor_forward(params, *unused_args):
    # SPredictor.forward ignores its inputs (value depends only on parameters).
    # TODO(synk): the PyTorch module's cached_value / backward-hook cache is
    # host-side Python state; under jit the single fused kernel is cheap to rerun.
    if params.get("w1") is None:             # `net is None` configuration
        return (params["out_parameters"] + params["bias_bias"]).reshape(-1)
    return spredictor_value(params)


# ---------------------------------------------------------------------------
# Parameter construction (mirrors SPredictor.__init__ / reset_parameters with a
# shared SimpleMLP(in, out, layers=2, mid_features=mid)).  Weights are stored
# pre-transposed as (in, out) so the kernel needs no per-call transpose.
# ---------------------------------------------------------------------------
def init_spredictor_params(key, in_features, mid_features, out_features,
                           dtype=jnp.float32):
    ks = jax.random.split(key, 6)

    def uniform(k, shape, bound):
        return jax.random.uniform(k, shape, dtype, minval=-bound, maxval=bound)

    # SimpleMLP linears: PyTorch default init U(+-1/sqrt(fan_in)) for W and b.
    w1 = uniform(ks[0], (in_features, mid_features), 1.0 / math.sqrt(in_features))
    b1 = uniform(ks[1], (1, mid_features), 1.0 / math.sqrt(in_features))
    w2 = uniform(ks[2], (mid_features, out_features), 1.0 / math.sqrt(mid_features))
    b2 = uniform(ks[3], (1, out_features), 1.0 / math.sqrt(mid_features))

    # SPredictor.reset_parameters(): expansion_data ~ U(+-0.01);
    # out_parameters = ift - net(expansion_data), ift ~ U(+-0.01); bias_bias = 0.
    expansion_data = uniform(ks[4], (1, in_features), DEFAULT_BOUND)
    h = jax.nn.gelu(expansion_data @ w1 + b1, approximate=False)
    v = h @ w2 + b2
    ift = uniform(ks[5], (1, out_features), DEFAULT_BOUND)
    out_parameters = (ift - v).astype(dtype)
    bias_bias = jnp.zeros((1,), dtype)

    return dict(expansion_data=expansion_data, w1=w1, b1=b1, w2=w2, b2=b2,
                out_parameters=out_parameters, bias_bias=bias_bias)


def spredictor_reference(params):
    h = jax.nn.gelu(params["expansion_data"] @ params["w1"] + params["b1"],
                    approximate=False)
    v = h @ params["w2"] + params["b2"]
    return (v + params["out_parameters"] + params["bias_bias"]).reshape(-1)


if __name__ == "__main__":
    # Small, TPU-friendly shapes: shared SimpleMLP 128 -> 128 -> 256.
    in_features, mid_features, out_features = 128, 128, 256

    params = init_spredictor_params(jax.random.PRNGKey(0),
                                    in_features, mid_features, out_features)

    value = spredictor_forward(params)          # forward ignores any inputs
    value = jax.block_until_ready(value)

    ref = spredictor_reference(params)
    assert value.shape == (out_features,)
    assert jnp.allclose(value, ref, atol=1e-4, rtol=1e-4), "mismatch vs reference"
    print("KERNEL_OK")
</pallas_src>

<mosaic_0001>
module attributes {stable_mosaic.version = 11 : i64} {
  func.func @_spredictor_kernel(%arg0: memref<1x128xf32, #tpu.memory_space<vmem>>, %arg1: memref<128x128xf32, #tpu.memory_space<vmem>>, %arg2: memref<1x128xf32, #tpu.memory_space<vmem>>, %arg3: memref<128x256xf32, #tpu.memory_space<vmem>>, %arg4: memref<1x256xf32, #tpu.memory_space<vmem>>, %arg5: memref<1x256xf32, #tpu.memory_space<vmem>>, %arg6: memref<1xf32, #tpu.memory_space<smem>>, %arg7: memref<1x256xf32, #tpu.memory_space<vmem>>) attributes {dimension_semantics = [], scalar_prefetch = 0 : i64, scratch_operands = 0 : i64, tpu.core_type = #tpu.core_type<tc>} {
    %c0 = arith.constant 0 : index
    %c0_0 = arith.constant 0 : index
    %0 = vector.load %arg0[%c0, %c0_0] : memref<1x128xf32, #tpu.memory_space<vmem>>, vector<1x128xf32>
    %1 = vector.shape_cast %0 : vector<1x128xf32> to vector<1x128xf32>
    %2 = vector.broadcast %1 : vector<1x128xf32> to vector<8x128xf32>
    %c0_1 = arith.constant 0 : index
    %c0_2 = arith.constant 0 : index
    %3 = vector.load %arg1[%c0_1, %c0_2] : memref<128x128xf32, #tpu.memory_space<vmem>>, vector<128x128xf32>
    %cst = arith.constant dense<0.000000e+00> : vector<8x128xf32>
    %4 = tpu.matmul %2, %3, %cst {dimension_numbers = #tpu.dot_dimension_numbers<[1], [0], [0], [1], [0, 0, 1, 1], [], []>} : vector<8x128xf32>, vector<128x128xf32>, vector<8x128xf32> -> vector<8x128xf32>
    %c0_3 = arith.constant 0 : index
    %c0_4 = arith.constant 0 : index
    %5 = vector.load %arg2[%c0_3, %c0_4] : memref<1x128xf32, #tpu.memory_space<vmem>>, vector<1x128xf32>
    %6 = vector.broadcast %5 : vector<1x128xf32> to vector<8x128xf32>
    %7 = arith.addf %4, %6 : vector<8x128xf32>
    %cst_5 = arith.constant 5.000000e-01 : f32
    %8 = vector.broadcast %cst_5 : f32 to vector<8x128xf32>
    %9 = arith.mulf %8, %7 : vector<8x128xf32>
    %cst_6 = arith.constant 0.707106769 : f32
    %10 = vector.broadcast %cst_6 : f32 to vector<8x128xf32>
    %11 = arith.mulf %7, %10 : vector<8x128xf32>
    %12 = math.absf %11 : vector<8x128xf32>
    %cst_7 = arith.constant 0.327591091 : f32
    %13 = vector.broadcast %cst_7 : f32 to vector<8x128xf32>
    %14 = arith.mulf %13, %12 : vector<8x128xf32>
    %cst_8 = arith.constant 1.000000e+00 : f32
    %15 = vector.broadcast %cst_8 : f32 to vector<8x128xf32>
    %16 = arith.addf %15, %14 : vector<8x128xf32>
    %cst_9 = arith.constant 1.000000e+00 : f32
    %17 = vector.broadcast %cst_9 : f32 to vector<8x128xf32>
    %18 = arith.divf %17, %16 : vector<8x128xf32>
    %cst_10 = arith.constant 1.06140542 : f32
    %19 = vector.broadcast %cst_10 : f32 to vector<8x128xf32>
    %20 = arith.mulf %19, %18 : vector<8x128xf32>
    %cst_11 = arith.constant -1.45315206 : f32
    %21 = vector.broadcast %cst_11 : f32 to vector<8x128xf32>
    %22 = arith.addf %20, %21 : vector<8x128xf32>
    %23 = arith.mulf %22, %18 : vector<8x128xf32>
    %cst_12 = arith.constant 1.42141378 : f32
    %24 = vector.broadcast %cst_12 : f32 to vector<8x128xf32>
    %25 = arith.addf %23, %24 : vector<8x128xf32>
    %26 = arith.mulf %25, %18 : vector<8x128xf32>
    %cst_13 = arith.constant -0.284496725 : f32
    %27 = vector.broadcast %cst_13 : f32 to vector<8x128xf32>
    %28 = arith.addf %26, %27 : vector<8x128xf32>
    %29 = arith.mulf %28, %18 : vector<8x128xf32>
    %cst_14 = arith.constant 0.254829586 : f32
    %30 = vector.broadcast %cst_14 : f32 to vector<8x128xf32>
    %31 = arith.addf %29, %30 : vector<8x128xf32>
    %32 = arith.mulf %31, %18 : vector<8x128xf32>
    %33 = arith.mulf %12, %12 : vector<8x128xf32>
    %cst_15 = arith.constant 0.000000e+00 : f32
    %34 = vector.broadcast %cst_15 : f32 to vector<8x128xf32>
    %35 = arith.subf %34, %33 : vector<8x128xf32>
    %36 = math.exp %35 : vector<8x128xf32>
    %37 = arith.mulf %32, %36 : vector<8x128xf32>
    %cst_16 = arith.constant 1.000000e+00 : f32
    %38 = vector.broadcast %cst_16 : f32 to vector<8x128xf32>
    %39 = arith.subf %38, %37 : vector<8x128xf32>
    %cst_17 = arith.constant 0.000000e+00 : f32
    %40 = vector.broadcast %cst_17 : f32 to vector<8x128xf32>
    %41 = arith.cmpf olt, %11, %40 : vector<8x128xf32>
    %cst_18 = arith.constant 0.000000e+00 : f32
    %42 = vector.broadcast %cst_18 : f32 to vector<8x128xf32>
    %43 = arith.subf %42, %39 : vector<8x128xf32>
    %44 = arith.select %41, %43, %39 : vector<8x128xi1>, vector<8x128xf32>
    %cst_19 = arith.constant 1.000000e+00 : f32
    %45 = vector.broadcast %cst_19 : f32 to vector<8x128xf32>
    %46 = arith.addf %45, %44 : vector<8x128xf32>
    %47 = arith.mulf %9, %46 : vector<8x128xf32>
    %c0_20 = arith.constant 0 : index
    %c0_21 = arith.constant 0 : index
    %48 = vector.load %arg3[%c0_20, %c0_21] : memref<128x256xf32, #tpu.memory_space<vmem>>, vector<128x256xf32>
    %cst_22 = arith.constant dense<0.000000e+00> : vector<8x256xf32>
    %49 = tpu.matmul %47, %48, %cst_22 {dimension_numbers = #tpu.dot_dimension_numbers<[1], [0], [0], [1], [0, 0, 1, 1], [], []>} : vector<8x128xf32>, vector<128x256xf32>, vector<8x256xf32> -> vector<8x256xf32>
    %c0_23 = arith.constant 0 : index
    %c0_24 = arith.constant 0 : index
    %50 = vector.load %arg4[%c0_23, %c0_24] : memref<1x256xf32, #tpu.memory_space<vmem>>, vector<1x256xf32>
    %51 = vector.broadcast %50 : vector<1x256xf32> to vector<8x256xf32>
    %52 = arith.addf %49, %51 : vector<8x256xf32>
    %53 = vector.extract_strided_slice %52 {offsets = [0, 0], sizes = [1, 256], strides = [1, 1]} : vector<8x256xf32> to vector<1x256xf32>
    %c0_25 = arith.constant 0 : index
    %c0_26 = arith.constant 0 : index
    %54 = vector.load %arg5[%c0_25, %c0_26] : memref<1x256xf32, #tpu.memory_space<vmem>>, vector<1x256xf32>
    %55 = arith.addf %53, %54 : vector<1x256xf32>
    %c0_27 = arith.constant 0 : index
    %56 = memref.load %arg6[%c0_27] : memref<1xf32, #tpu.memory_space<smem>>
    %57 = vector.broadcast %56 : f32 to vector<1x256xf32>
    %58 = arith.addf %55, %57 : vector<1x256xf32>
    %c0_28 = arith.constant 0 : index
    %c0_29 = arith.constant 0 : index
    %59 = vector.load %arg7[%c0_28, %c0_29] : memref<1x256xf32, #tpu.memory_space<vmem>>, vector<1x256xf32>
    tpu.vector_store %arg7[%c0_28, %c0_29], %58 {strides = array<i32>} : memref<1x256xf32, #tpu.memory_space<vmem>>, vector<1x256xf32>,
    return
  }
}

</mosaic_0001>

<bundles_post_ra>
// kernel: tpu_custom_call.1
= control target key start
LH: loop header
LB: loop body
LE: loop exit
PB: predicated region body
PF: predicated region fallthrough
CT: control target
= control target key end

     0   :  { %13 = vsyncpa [#allocation4], 0  ;;  %s654_s0 = inlined_call_operand.vmem [shape: f32[1,128], index: 0, kind: input, shape index: {}]   ;;  %s655_s1 = inlined_call_operand.hbm [shape: f32[128,128], index: 1, kind: input, shape index: {}]   ;;  %s656_s2 = inlined_call_operand.vmem [shape: f32[1,128], index: 2, kind: input, shape index: {}]   ;;  %s657_s3 = inlined_call_operand.hbm [shape: f32[128,256], index: 3, kind: input, shape index: {}]   ;;  %s658_s4 = inlined_call_operand.vmem [shape: f32[1,256], index: 4, kind: input, shape index: {}]   ;;  %s659_s5 = inlined_call_operand.vmem [shape: f32[1,256], index: 5, kind: input, shape index: {}]   ;;  %s660_s6 = inlined_call_operand.<no memory space> [shape: f32[1], index: 6, kind: input, shape index: {}]   ;;  %s661_s7 = inlined_call_operand.hbm [shape: f32[1,256], index: 7, kind: output, shape index: {}]  }
   0x1   :  { %14 = vsyncpa [#allocation7], 0 }
   0x2   :  { %15 = vsyncpa [#allocation5], 0  ;;  %s552_s24 = smov [#allocation3]   ;;  %s480_s28 = scalar_lea.hbm %s655_s1, 2048 }
   0x3   :  { %s23_s25 = sshll.u32 %s552_s24, 4  ;;  %p481_p0 = scmp.ne.s32.totalorder %s655_s1, %s480_s28  ;;  %s24_s25 = int_to_ptr.vmem [resolvable:$true] %s23_s25 }
   0x4   :  { %p484_p1 = scmp.lt.u32.totalorder %s480_s28, %s655_s1 }
   0x6   :  { %p486_p2 = pnand %p484_p1, %p481_p0 }
   0x8   :  { %489 = shalt.err (!%p486_p2)
}
   0x9   :  { %s490_s10 = scalar_lea.vmem %s24_s25, 2048  ;;  %p495_p4 = scmp.lt.s32.totalorder %s24_s25, %s24_s25 }
   0xa   :  { %p491_p3 = scmp.ne.s32.totalorder %s24_s25, %s490_s10  ;;  %p496_p5 = scmp.lt.s32.totalorder %s490_s10, %s490_s10 }
   0xc   :  { %p497_p6 = por %p496_p5, %p495_p4 }
   0xe   :  { %p498_p7 = pnand %p497_p6, %p491_p3 }
  0x10   :  { %501 = shalt.err (!%p498_p7)
}
  0x11   :  { %s553_s11 = smov 128   ;;  %s554_s12 = smov 8  }
  0x12   :  { %29 = dma.hbm_to_vmem [thread:$0]  %s655_s1, 2048, %s24_s25, [#allocation4], %s553_s11, %s553_s11, %s554_s12  }
  0x13   :  { %s555_s15 = smov [#allocation6]   ;;  %s502_s19 = scalar_lea.hbm %s657_s3, 4096 }
  0x14   :  { %s37_s16 = sshll.u32 %s555_s15, 4  ;;  %p503_p8 = scmp.ne.s32.totalorder %s657_s3, %s502_s19  ;;  %s38_s16 = int_to_ptr.vmem [resolvable:$true] %s37_s16 }
  0x15   :  { %p506_p9 = scmp.lt.u32.totalorder %s502_s19, %s657_s3 }
  0x17   :  { %p508_p10 = pnand %p506_p9, %p503_p8 }
  0x19   :  { %511 = shalt.err (!%p508_p10)
}
  0x1a   :  { %s512_s24 = scalar_lea.vmem %s38_s16, 4096  ;;  %p517_p12 = scmp.lt.s32.totalorder %s38_s16, %s38_s16 }
  0x1b   :  { %p513_p11 = scmp.ne.s32.totalorder %s38_s16, %s512_s24  ;;  %p518_p13 = scmp.lt.s32.totalorder %s512_s24, %s512_s24 }
  0x1d   :  { %p519_p0 = por %p518_p13, %p517_p12 }
  0x1f   :  { %p520_p1 = pnand %p519_p0, %p513_p11 }
  0x21   :  { %523 = shalt.err (!%p520_p1)
}
  0x22   :  { %s556_s1 = smov 256   ;;  %s557_s25 = smov 16  }
  0x23   :  { %43 = dma.hbm_to_vmem [thread:$0]  %s657_s3, 4096, %s38_s16, [#allocation7], %s556_s1, %s556_s1, %s557_s25  }
  0x24   :  { %546 = dma.done.wait [#allocation4], 2048  }
  0x25   :  { %547 = vsyncadd [#allocation4], 4294965248 }
  0x26   :  { %548 = dma.done.wait [#allocation7], 4096  }
  0x27   :  { %549 = vsyncadd [#allocation7], 4294963200  ;;  %v558_v0 = vmov 0.0|0.0   ;;  %vm559_vm0 = vmmov 0   ;;  %v560_v1 = vmov 0.0   ;;  %v63_v2 = vld [vmem:[#allocation3] sm:$0xff] }
  0x28   :  { %409 = vmatprep.subr.bf16.mxu0 %v558_v0  ;;  %406 = vmatprep.mubr.msk.f32.mxu0 %vm559_vm0, %v560_v1  ;;  %v64_v3 = vld [vmem:[#allocation3 + $0x8] sm:$0xff]  ;;  %v65_v4 = vld [vmem:[#allocation3 + $0x10] sm:$0xff]  ;;  %v66_v6 = vld [vmem:[#allocation3 + $0x18] sm:$0xff] }
  0x29   :  { %291 = vmatprep.mubr.f32.mxu1 %v560_v1  ;;  %v410_v5 = vpack.c.bf16 %v64_v3, %v63_v2  ;;  %v413_v7 = vpack.c.bf16 %v66_v6, %v65_v4  ;;  %v67_v8 = vld [vmem:[#allocation3 + $0x20] sm:$0xff]  ;;  %v68_v9 = vld [vmem:[#allocation3 + $0x28] sm:$0xff]  ;;  %v69_v11 = vld [vmem:[#allocation3 + $0x30] sm:$0xff] }
  0x2a   :  { %v416_v10 = vpack.c.bf16 %v68_v9, %v67_v8  ;;  %v70_v12 = vld [vmem:[#allocation3 + $0x38] sm:$0xff]  ;;  %v71_v14 = vld [vmem:[#allocation3 + $0x40] sm:$0xff]  ;;  %v72_v15 = vld [vmem:[#allocation3 + $0x48] sm:$0xff] }
  0x2b   :  { %411 = vmatpush3.bf16.msra.mxu0 %v410_v5  ;;  %v419_v13 = vpack.c.bf16 %v70_v12, %v69_v11  ;;  %v422_v16 = vpack.c.bf16 %v72_v15, %v71_v14  ;;  %v73_v17 = vld [vmem:[#allocation3 + $0x50] sm:$0xff]  ;;  %v74_v18 = vld [vmem:[#allocation3 + $0x58] sm:$0xff]  ;;  %v75_v20 = vld [vmem:[#allocation3 + $0x60] sm:$0xff] }
  0x2c   :  { %412 = vmatprep.subr.bf16.mxu0 %v558_v0  ;;  %v425_v19 = vpack.c.bf16 %v74_v18, %v73_v17  ;;  %v76_v21 = vld [vmem:[#allocation3 + $0x68] sm:$0xff]  ;;  %v77_v23 = vld [vmem:[#allocation3 + $0x70] sm:$0xff]  ;;  %v78_v24 = vld [vmem:[#allocation3 + $0x78] sm:$0xff] }
  0x2d   :  { %v428_v22 = vpack.c.bf16 %v76_v21, %v75_v20  ;;  %v431_v25 = vpack.c.bf16 %v78_v24, %v77_v23  ;;  %v355_v26 = vld [vmem:[%s654_s0] ss:$0 sm:$0xff]  ;;  %v184_v27 = vld [vmem:[#allocation6 + $0x8] sm:$0xff]  ;;  %v186_v28 = vld [vmem:[#allocation6 + $0x18] sm:$0xff] }
  0x2e   :  { %v183_v29 = vld [vmem:[#allocation6] sm:$0xff]  ;;  %v433_v30 = vpack.c.bf16 %v186_v28, %v184_v27  ;;  %v185_v31 = vld [vmem:[#allocation6 + $0x10] sm:$0xff]  ;;  %v188_v32 = vld [vmem:[#allocation6 + $0x28] sm:$0xff] }
  0x2f   :  { %414 = vmatpush3.bf16.msra.mxu0 %v413_v7  ;;  %v190_v33 = vld [vmem:[#allocation6 + $0x38] sm:$0xff]  ;;  %v435_v34 = vpack.c.bf16 %v185_v31, %v183_v29  ;;  %v187_v36 = vld [vmem:[#allocation6 + $0x20] sm:$0xff]  ;;  %v189_v37 = vld [vmem:[#allocation6 + $0x30] sm:$0xff] }
  0x30   :  { %415 = vmatprep.subr.bf16.mxu0 %v558_v0  ;;  %v437_v35 = vpack.c.bf16 %v190_v33, %v188_v32  ;;  %v192_v38 = vld [vmem:[#allocation6 + $0x48] sm:$0xff]  ;;  %434 = vmatprep.subr.bf16.mxu1 %v433_v30  ;;  %v194_v39 = vld [vmem:[#allocation6 + $0x58] sm:$0xff]  ;;  %v439_v40 = vpack.c.bf16 %v189_v37, %v187_v36  ;;  %v191_v42 = vld [vmem:[#allocation6 + $0x40] sm:$0xff] }
  0x31   :  { %436 = vmatpush1.bf16.msra.mxu1 %v435_v34  ;;  %v441_v41 = vpack.c.bf16 %v194_v39, %v192_v38  ;;  %v193_v43 = vld [vmem:[#allocation6 + $0x50] sm:$0xff]  ;;  %v196_v44 = vld [vmem:[#allocation6 + $0x68] sm:$0xff]  ;;  %v198_v45 = vld [vmem:[#allocation6 + $0x78] sm:$0xff] }
  0x32   :  { %438 = vmatprep.subr.bf16.mxu1 %v437_v35  ;;  %v443_v46 = vpack.c.bf16 %v193_v43, %v191_v42  ;;  %v445_v47 = vpack.c.bf16 %v198_v45, %v196_v44  ;;  %v195_v48 = vld [vmem:[#allocation6 + $0x60] sm:$0xff]  ;;  %v197_v49 = vld [vmem:[#allocation6 + $0x70] sm:$0xff]  ;;  %v200_v50 = vld [vmem:[#allocation6 + $0x88] sm:$0xff] }
  0x33   :  { %417 = vmatpush3.bf16.msra.mxu0 %v416_v10  ;;  %v202_v51 = vld [vmem:[#allocation6 + $0x98] sm:$0xff]  ;;  %v447_v52 = vpack.c.bf16 %v197_v49, %v195_v48  ;;  %v199_v54 = vld [vmem:[#allocation6 + $0x80] sm:$0xff]  ;;  %v201_v55 = vld [vmem:[#allocation6 + $0x90] sm:$0xff]  ;;  %v561_v48 = vmov 1966171168  }
  0x34   :  { %418 = vmatprep.subr.bf16.mxu0 %v558_v0  ;;  %v449_v53 = vpack.c.bf16 %v202_v51, %v200_v50  ;;  %v204_v56 = vld [vmem:[#allocation6 + $0xa8] sm:$0xff]  ;;  %v206_v57 = vld [vmem:[#allocation6 + $0xb8] sm:$0xff]  ;;  %v451_v58 = vpack.c.bf16 %v201_v55, %v199_v54  ;;  %v203_v60 = vld [vmem:[#allocation6 + $0xa0] sm:$0xff]  ;;  %v320_v49 = vunpack.c.l.s4 %v561_v48  ;;  %v313_v55 = vstv %s660_s6 }
  0x35   :  { %440 = vmatpush1.bf16.msra.mxu1 %v439_v40  ;;  %v453_v59 = vpack.c.bf16 %v206_v57, %v204_v56  ;;  %v205_v61 = vld [vmem:[#allocation6 + $0xb0] sm:$0xff]  ;;  %v208_v62 = vld [vmem:[#allocation6 + $0xc8] sm:$0xff]  ;;  %v210_v63 = vld [vmem:[#allocation6 + $0xd8] sm:$0xff]  ;;  %v217_v40 = vlaneseq }
  0x36   :  { %442 = vmatprep.subr.bf16.mxu1 %v441_v41  ;;  %v457_v1 = vpack.c.bf16 %v210_v63, %v208_v62  ;;  %v207_v2 = vld [vmem:[#allocation6 + $0xc0] sm:$0xff]  ;;  %v209_v3 = vld [vmem:[#allocation6 + $0xd0] sm:$0xff]  ;;  %v212_v4 = vld [vmem:[#allocation6 + $0xe8] sm:$0xff]  ;;  %v321_v57 = vunpack.c.0.s8 %v320_v49 }
  0x37   :  { %420 = vmatpush3.bf16.msra.mxu0 %v419_v13  ;;  %v214_v5 = vld [vmem:[#allocation6 + $0xf8] sm:$0xff]  ;;  %v459_v6 = vpack.c.bf16 %v209_v3, %v207_v2  ;;  %v211_v8 = vld [vmem:[#allocation6 + $0xe0] sm:$0xff]  ;;  %v213_v9 = vld [vmem:[#allocation6 + $0xf0] sm:$0xff]  ;;  %v218_v41 = vshrl.u32 %v217_v40, 7  ;;  %vm336_vm2 = vcmp.lt.s32.totalorder %v217_v40, 256 }
  0x38   :  { %421 = vmatprep.subr.bf16.mxu0 %v558_v0  ;;  %v461_v7 = vpack.c.bf16 %v214_v5, %v212_v4  ;;  %v463_v10 = vpack.c.bf16 %v213_v9, %v211_v8  ;;  %v356_v11 = vld [vmem:[%s656_s2] ss:$0 sm:$0xff] }
  0x39   :  { %444 = vmatpush1.bf16.msra.mxu1 %v443_v46  ;;  %v219_v42 = vsub.s32 0, %v218_v41  ;;  %v215_v43 = vld [vmem:[%s658_s4] sm:$0x3]  ;;  %v223_v44 = vsub.s32 1, %v218_v41  ;;  %v324_v62 = vsub.s32 %v321_v57, %v218_v41  ;;  %s562_s4 = smov [#allocation8]  }
  0x3a   :  { %446 = vmatprep.subr.bf16.mxu1 %v445_v47  ;;  %v298_v45 = vld [vmem:[%s659_s5] sm:$0x3]  ;;  %s345_s5 = sshll.u32 %s562_s4, 4  ;;  %s346_s5 = int_to_ptr.vmem [resolvable:$true] %s345_s5 }
  0x3b   :  { %423 = vmatpush3.bf16.msra.mxu0 %v422_v16  ;;  %v220_v46 = vrot.slane %v215_v43, %v219_v42  ;;  %v224_v47 = vrot.slane %v215_v43, %v223_v44  ;;  %v303_v50 = vrot.slane %v298_v45, %v219_v42  ;;  %s524_s12 = scalar_lea.vmem %s346_s5, 32  ;;  %p529_p3 = scmp.lt.s32.totalorder %s346_s5, %s346_s5 }
  0x3c   :  { %424 = vmatprep.subr.bf16.mxu0 %v558_v0  ;;  %p525_p2 = scmp.ne.s32.totalorder %s346_s5, %s524_s12  ;;  %p530_p4 = scmp.lt.s32.totalorder %s524_s12, %s524_s12 }
  0x3d   :  { %448 = vmatpush1.bf16.msra.mxu1 %v447_v52  ;;  %v307_v52 = vrot.slane %v298_v45, %v223_v44 }
  0x3e   :  { %450 = vmatprep.subr.bf16.mxu1 %v449_v53  ;;  %p531_p5 = por %p530_p4, %p529_p3 }
  0x3f   :  { %426 = vmatpush3.bf16.msra.mxu0 %v425_v19 }
  0x40   :  { %427 = vmatprep.subr.bf16.mxu0 %v558_v0  ;;  %p532_p6 = pnand %p531_p5, %p525_p2 }
  0x41   :  { %452 = vmatpush1.bf16.msra.mxu1 %v451_v58 }
  0x42   :  { %454 = vmatprep.subr.bf16.mxu1 %v453_v59 }
  0x43   :  { %429 = vmatpush3.bf16.msra.mxu0 %v428_v22 }
  0x44   :  { %430 = vmatprep.subr.bf16.mxu0 %v558_v0  ;;  %v455_v0 = vpack.c.bf16 %v205_v61, %v203_v60 }
  0x46   :  { %456 = vmatpush1.bf16.msra.mxu1 %v455_v0 }
  0x47   :  { %432 = vmatpush3.bf16.msra.mxu0 %v431_v25  ;;  %458 = vmatprep.subr.bf16.mxu1 %v457_v1 }
  0x4a   :  { %407 = vmatmul.mubr.f32.vlgmr.msra.gmra.mrb[0].mxu0 %v355_v26  ;;  %460 = vmatpush1.bf16.msra.mxu1 %v459_v6 }
  0x4b   :  { %462 = vmatprep.subr.bf16.mxu1 %v461_v7 }
  0x4e   :  { %464 = vmatpush1.bf16.msra.mxu1 %v463_v10 }
 0x11d   :  { %v152_v12 = vpop.f32.mrb[0].mxu0 }
 0x11e   :  { %v153_v13 = vadd.f32 %v356_v11, %v152_v12  ;;  %v408_v14 = vpop.f32.mrb[1].mxu0 }
 0x120   :  { %v157_v15 = vmul.f32 0.70710677, %v153_v13  ;;  %v156_v37 = vmul.f32 0.5, %v153_v13 }
 0x122   :  { %v158_v16 = vand.u32 2147483647, %v157_v15  ;;  %vm178_vm1 = vcmp.lt.f32.partialorder %v157_v15, 0.0 }
 0x124   :  { %v159_v17 = vmul.f32 0.3275911, %v158_v16  ;;  %v172_v19 = vmul.f32 %v158_v16, %v158_v16 }
 0x126   :  { %v160_v18 = vadd.f32 1.0, %v159_v17  ;;  %v173_v21 = vsub.f32 0.0, %v172_v19 }
 0x128   :  { %476 = vrcp.f32 %v160_v18  ;;  %v174_v24 = vmul.f32 1.442695, %v173_v21 }
 0x12a   :  { %478 = vpow2.f32 %v174_v24 }
 0x132   :  { %v477_v20 = vpop.eup %476 }
 0x133   :  { %v163_v22 = vmul.f32 1.0614054, %v477_v20 }
 0x134   :  { %v479_v32 = vpop.eup %478 }
 0x135   :  { %v164_v23 = vadd.f32 -1.4531521, %v163_v22 }
 0x137   :  { %v165_v25 = vmul.f32 %v477_v20, %v164_v23 }
 0x139   :  { %v166_v26 = vadd.f32 1.4214138, %v165_v25 }
 0x13b   :  { %v167_v27 = vmul.f32 %v477_v20, %v166_v26 }
 0x13d   :  { %v168_v28 = vadd.f32 -0.28449672, %v167_v27 }
 0x13f   :  { %v169_v29 = vmul.f32 %v477_v20, %v168_v28 }
 0x141   :  { %v170_v30 = vadd.f32 0.2548296, %v169_v29 }
 0x143   :  { %v171_v31 = vmul.f32 %v477_v20, %v170_v30 }
 0x145   :  { %v176_v33 = vmul.f32 %v479_v32, %v171_v31 }
 0x147   :  { %v177_v34 = vsub.f32 1.0, %v176_v33 }
 0x149   :  { %v179_v35 = vsub.f32 0.0, %v177_v34 }
 0x14b   :  { %v180_v36 = vsel %vm178_vm1, %v179_v35, %v177_v34 }
 0x14c   :  { %v181_v38 = vadd.f32 1.0, %v180_v36 }
 0x14e   :  { %v182_v39 = vmul.f32 %v181_v38, %v156_v37 }
 0x150   :  { %292 = vmatmul.mubr.f32.vlgmr.msra.gmra.mrb[0].mxu1 %v182_v39 }
 0x223   :  { %v293_v51 = vpop.f32.mrb[0].mxu1 }
 0x224   :  { %v294_v53 = vadd.f32 %v293_v51, %v220_v46  ;;  %v295_v54 = vpop.f32.mrb[1].mxu1 }
 0x225   :  { %v296_v56 = vadd.f32 %v295_v54, %v224_v47 }
 0x226   :  { %v310_v58 = vadd.f32 %v303_v50, %v294_v53 }
 0x227   :  { %v311_v59 = vadd.f32 %v307_v52, %v296_v56 }
 0x228   :  { %v314_v60 = vadd.f32 %v313_v55, %v310_v58 }
 0x229   :  { %v315_v61 = vadd.f32 %v313_v55, %v311_v59 }
 0x22b   :  { %v318_v63 = vcombine.low %v314_v60, %v315_v61 }
 0x22d   :  { %v325_v0 = vrot.slane %v318_v63, %v324_v62 }
 0x22f   :  { %v332_v1 = vrot.slane %v325_v0, %v324_v62 }
 0x231   :  { %338 = vst.msk [vmem:[#allocation8] sm:$0x3] %vm336_vm2, %v332_v1 }
 0x232   :  { %535 = shalt.err (!%p532_p6)
}
 0x233   :  { %s536_s14 = scalar_lea.hbm %s661_s7, 32 }
 0x234   :  { %p537_p7 = scmp.ne.s32.totalorder %s661_s7, %s536_s14  ;;  %p540_p8 = scmp.lt.u32.totalorder %s536_s14, %s661_s7 }
 0x236   :  { %p542_p9 = pnand %p540_p8, %p537_p7 }
 0x238   :  { %545 = shalt.err (!%p542_p9)
}
 0x239   :  { %348 = dma.vmem_to_hbm [thread:$0]  %s346_s5, 32, %s661_s7, [#allocation5]  }
 0x23a   :  { %550 = dma.done.wait [#allocation5], 32  }
 0x23b   :  { %551 = vsyncadd [#allocation5], 4294967264 }
 0x23c   :  { %352 = vsyncpa [#allocation4], 1 }
 0x23d   :  { %353 = vsyncpa [#allocation7], 1 }
 0x23e   :  { %354 = vsyncpa [#allocation5], 1 }

</bundles_post_ra>
